<compile_context>
chip_gen: v7x
topology: tpu7x:2x2x1
jax: 0.10.0
libtpu: 0.0.40
codegen_flags: <defaults>
</compile_context>

<pallas_src>
import functools

import jax
import jax.numpy as jnp
from jax.experimental import pallas as pl
from jax.experimental.pallas import tpu as pltpu


CONFIG = dict(
    convbn_blocks=3,
    convbn_channels=[4, 8, 16, 8],
    conv_kernel_size=[3, 3, 3],
    conv_kernel_strides=[2, 2, 1],
    latent_dim=8,
)


# ----------------------------------------------------------------------------
# Fused encoder kernel: all conv+BN+LeakyReLU layers for one batch element.
# ----------------------------------------------------------------------------
def _layer_compute(x, s_ref, g_ref, shift_ref, *, k, apply_act):
    """One conv layer on a (H, W*Cin) slab -> (Ho, Wo*Cout) slab.

    s_ref:     (k, Ho, H)        0/1 vertical-tap selection matrices
    g_ref:     (k, W*Cin, Wo*Cout) width-Toeplitz weights (BN scale folded in)
    shift_ref: (1, Wo*Cout)      per-channel shift tiled over Wo
    """
    Ho = s_ref.shape[1]
    WoCout = g_ref.shape[2]
    acc = jnp.zeros((Ho, WoCout), jnp.float32)
    for di in range(k):                                   # static unroll (k=3)
        t = jnp.dot(s_ref[di], x, preferred_element_type=jnp.float32)
        acc = acc + jnp.dot(t, g_ref[di], preferred_element_type=jnp.float32)
    y = acc + shift_ref[...]
    if apply_act:
        y = jnp.where(y >= 0.0, y, 0.2 * y)               # LeakyReLU(0.2)
    return y


def _encoder_kernel(*refs, n_layers, ksizes):
    # refs = (x_ref, [S, G, shift] * n_layers ..., o_ref)
    x_ref = refs[0]
    o_ref = refs[-1]
    layer_refs = refs[1:-1]

    x = x_ref[0]                                          # (H, W*Cin) f32
    for i in range(n_layers):
        s_ref, g_ref, sh_ref = layer_refs[3 * i: 3 * i + 3]
        x = _layer_compute(x, s_ref, g_ref, sh_ref,
                           k=ksizes[i], apply_act=(i < n_layers - 1))
    o_ref[0] = x.astype(o_ref.dtype)                      # (Ho_last, Wo_last*Cout_last)


# ----------------------------------------------------------------------------
# Weight-only preprocessing (tiny, runs on the weights, not the activations).
# ----------------------------------------------------------------------------
def _build_layer_consts(w_torch, scale, shift, H, W, *, stride, k, pad):
    """Build S (k,Ho,H), G (k,W*Cin,Wo*Cout), shift (1,Wo*Cout) for one layer."""
    Cout, Cin = int(w_torch.shape[0]), int(w_torch.shape[1])
    Ho = (H + 2 * pad - k) // stride + 1
    Wo = (W + 2 * pad - k) // stride + 1

    # torch (Cout, Cin, kh, kw) -> (kh, kw, Cin, Cout); fold BN scale into cols
    w_hwio = jnp.transpose(w_torch, (2, 3, 1, 0)).astype(jnp.float32)
    w_scaled = w_hwio * scale.astype(jnp.float32)[None, None, None, :]

    # Vertical 0/1 selectors: S[di, io, h] = 1  iff  h == stride*io + di - pad
    io = jnp.arange(Ho)
    hh = jnp.arange(H)
    S = jnp.stack(
        [(hh[None, :] == (stride * io[:, None] + di - pad)).astype(jnp.float32)
         for di in range(k)], axis=0)                            # (k, Ho, H)

    # Horizontal selectors: colsel[dj, w, jo] = 1 iff w == stride*jo + dj - pad
    jo = jnp.arange(Wo)
    ww = jnp.arange(W)
    colsel = jnp.stack(
        [(ww[:, None] == (stride * jo[None, :] + dj - pad)).astype(jnp.float32)
         for dj in range(k)], axis=0)                            # (k, W, Wo)

    # G[di, w*Cin+c, jo*Cout+co] = sum_dj colsel[dj,w,jo] * w_scaled[di,dj,c,co]
    G = jnp.einsum('dwj,edco->ewcjo', colsel, w_scaled)          # (k,W,Cin,Wo,Cout)
    G = G.reshape(k, W * Cin, Wo * Cout)

    shift_flat = jnp.tile(shift.astype(jnp.float32), Wo)[None, :]  # (1, Wo*Cout)
    return S, G, shift_flat, Ho, Wo


def _full_spec(arr):
    """BlockSpec covering the whole (small) constant array; loaded once."""
    nd = arr.ndim
    return pl.BlockSpec(arr.shape, lambda n: (0,) * nd)


# ----------------------------------------------------------------------------
# Encoder forward: one pallas_call for the whole stack.
# ----------------------------------------------------------------------------
def encoder_forward(x_nchw, params, cfg):
    N, Cin, H, W = x_nchw.shape
    n_layers = cfg["convbn_blocks"]
    eps = 1e-5

    consts = []
    ksizes = []
    h, w, c = H, W, Cin
    for i in range(n_layers):
        p = params[i]
        cout = int(p["w"].shape[0])
        k = cfg["conv_kernel_size"][i]
        s = cfg["conv_kernel_strides"][i]
        ksizes.append(k)
        if i < n_layers - 1:          # Conv + BN(eval) + LeakyReLU blocks
            scale = p["gamma"] / jnp.sqrt(p["running_var"] + eps)
            shift = p["beta"] + scale * (p["b"] - p["running_mean"])
        else:                          # final plain Conv
            scale = jnp.ones((cout,), jnp.float32)
            shift = p["b"]
        S, G, shift_flat, Ho, Wo = _build_layer_consts(
            p["w"], scale, shift, h, w, stride=s, k=k, pad=1)
        consts += [S, G, shift_flat]
        h, w, c = Ho, Wo, cout

    # NCHW -> (N, H, W*Cin) slab layout used inside the kernel (channel minor).
    x_rows = jnp.transpose(x_nchw, (0, 2, 3, 1)).reshape(N, H, W * Cin)
    x_rows = x_rows.astype(jnp.float32)

    in_specs = [pl.BlockSpec((1, H, W * Cin), lambda n: (n, 0, 0))]
    in_specs += [_full_spec(a) for a in consts]
    out_spec = pl.BlockSpec((1, h, w * c), lambda n: (n, 0, 0))

    out = pl.pallas_call(
        functools.partial(_encoder_kernel, n_layers=n_layers,
                          ksizes=tuple(ksizes)),
        out_shape=jax.ShapeDtypeStruct((N, h, w * c), jnp.float32),
        grid_spec=pltpu.PrefetchScalarGridSpec(
            num_scalar_prefetch=0,
            grid=(N,),                       # batch axis -> parallel (2 TCs on v7x)
            in_specs=in_specs,
            out_specs=out_spec,
        ),
        compiler_params=pltpu.CompilerParams(
            dimension_semantics=("parallel",)),
    )(x_rows, *consts)

    out = out.reshape(N, h, w, c)            # NHWC
    return jnp.transpose(out, (0, 3, 1, 2))  # NCHW (PyTorch convention)


# ----------------------------------------------------------------------------
# Parameter init (synthetic) + pure-JAX reference (lax.conv) for correctness.
# ----------------------------------------------------------------------------
def init_encoder_params(key, cfg):
    params = []
    n_layers = cfg["convbn_blocks"]          # 2 conv+bn+lrelu blocks + 1 conv
    for i in range(n_layers):
        cin = cfg["convbn_channels"][i]
        cout = cfg["convbn_channels"][i + 1]
        k = cfg["conv_kernel_size"][i]
        key, kw, kb, kg, kbt, km, kv = jax.random.split(key, 7)
        layer = {
            "w": 0.1 * jax.random.normal(kw, (cout, cin, k, k), jnp.float32),
            "b": 0.1 * jax.random.normal(kb, (cout,), jnp.float32),
        }
        if i < n_layers - 1:                 # BN params only for non-final layers
            layer.update({
                "gamma": 1.0 + 0.1 * jax.random.normal(kg, (cout,), jnp.float32),
                "beta": 0.1 * jax.random.normal(kbt, (cout,), jnp.float32),
                "running_mean": 0.1 * jax.random.normal(km, (cout,), jnp.float32),
                "running_var": 1.0 + 0.1 * jax.random.uniform(kv, (cout,), jnp.float32),
            })
        params.append(layer)
    return params


def encoder_reference(x_nchw, params, cfg):
    x = jnp.transpose(x_nchw, (0, 2, 3, 1)).astype(jnp.float32)
    n_layers = cfg["convbn_blocks"]
    for i in range(n_layers):
        p = params[i]
        w_hwio = jnp.transpose(p["w"], (2, 3, 1, 0))
        s = cfg["conv_kernel_strides"][i]
        y = jax.lax.conv_general_dilated(
            x, w_hwio, window_strides=(s, s), padding=((1, 1), (1, 1)),
            dimension_numbers=("NHWC", "HWIO", "NHWC")) + p["b"]
        if i < n_layers - 1:
            eps = 1e-5
            y = (y - p["running_mean"]) / jnp.sqrt(p["running_var"] + eps)
            y = y * p["gamma"] + p["beta"]
            y = jnp.where(y >= 0.0, y, 0.2 * y)
        x = y
    return jnp.transpose(x, (0, 3, 1, 2))


if __name__ == "__main__":
    key = jax.random.PRNGKey(0)
    kp, kx = jax.random.split(key)
    params = init_encoder_params(kp, CONFIG)

    # Input: batch=2, channels=4, spatial=16x16 (NCHW, like the torch module)
    x = jax.random.normal(kx, (2, 4, 16, 16), jnp.float32)

    fwd = jax.jit(lambda xx, pp: encoder_forward(xx, pp, CONFIG))
    out = jax.block_until_ready(fwd(x, params))

    ref = jax.block_until_ready(encoder_reference(x, params, CONFIG))
    assert out.shape == ref.shape == (2, CONFIG["latent_dim"], 4, 4), out.shape
    assert jnp.allclose(out, ref, atol=1e-4, rtol=1e-4), float(
        jnp.max(jnp.abs(out - ref)))

    print("KERNEL_OK")
</pallas_src>

<mosaic_0001>
module attributes {stable_mosaic.version = 11 : i64} {
  func.func @_encoder_kernel(%arg0: i32, %arg1: memref<1x16x64xf32, #tpu.memory_space<vmem>>, %arg2: memref<3x8x16xf32, #tpu.memory_space<vmem>>, %arg3: memref<3x64x64xf32, #tpu.memory_space<vmem>>, %arg4: memref<1x64xf32, #tpu.memory_space<vmem>>, %arg5: memref<3x4x8xf32, #tpu.memory_space<vmem>>, %arg6: memref<3x64x64xf32, #tpu.memory_space<vmem>>, %arg7: memref<1x64xf32, #tpu.memory_space<vmem>>, %arg8: memref<3x4x4xf32, #tpu.memory_space<vmem>>, %arg9: memref<3x64x32xf32, #tpu.memory_space<vmem>>, %arg10: memref<1x32xf32, #tpu.memory_space<vmem>>, %arg11: memref<1x4x32xf32, #tpu.memory_space<vmem>>) attributes {dimension_semantics = [#tpu.dimension_semantics<parallel>], iteration_bounds = array<i64: 2>, scalar_prefetch = 0 : i64, scratch_operands = 0 : i64, tpu.core_type = #tpu.core_type<tc>, window_params = [{transform_indices = @transform_0, window_bounds = array<i64: 1, 16, 64>}, {pipeline_mode = #tpu.pipeline_mode<synchronous>, transform_indices = @transform_1, window_bounds = array<i64: 3, 8, 16>}, {pipeline_mode = #tpu.pipeline_mode<synchronous>, transform_indices = @transform_2, window_bounds = array<i64: 3, 64, 64>}, {pipeline_mode = #tpu.pipeline_mode<synchronous>, transform_indices = @transform_3, window_bounds = array<i64: 1, 64>}, {pipeline_mode = #tpu.pipeline_mode<synchronous>, transform_indices = @transform_4, window_bounds = array<i64: 3, 4, 8>}, {pipeline_mode = #tpu.pipeline_mode<synchronous>, transform_indices = @transform_5, window_bounds = array<i64: 3, 64, 64>}, {pipeline_mode = #tpu.pipeline_mode<synchronous>, transform_indices = @transform_6, window_bounds = array<i64: 1, 64>}, {pipeline_mode = #tpu.pipeline_mode<synchronous>, transform_indices = @transform_7, window_bounds = array<i64: 3, 4, 4>}, {pipeline_mode = #tpu.pipeline_mode<synchronous>, transform_indices = @transform_8, window_bounds = array<i64: 3, 64, 32>}, {pipeline_mode = #tpu.pipeline_mode<synchronous>, transform_indices = @transform_9, window_bounds = array<i64: 1, 32>}, {transform_indices = @transform_10, window_bounds = array<i64: 1, 4, 32>}]} {
    %c0 = arith.constant 0 : index
    %c0_0 = arith.constant 0 : index
    %c0_1 = arith.constant 0 : index
    %0 = vector.load %arg1[%c0, %c0_0, %c0_1] : memref<1x16x64xf32, #tpu.memory_space<vmem>>, vector<1x16x64xf32>
    %1 = vector.shape_cast %0 : vector<1x16x64xf32> to vector<16x64xf32>
    %cst = arith.constant 0.000000e+00 : f32
    %2 = vector.broadcast %cst : f32 to vector<8x64xf32>
    %c0_2 = arith.constant 0 : index
    %c0_3 = arith.constant 0 : index
    %c0_4 = arith.constant 0 : index
    %3 = vector.load %arg2[%c0_2, %c0_3, %c0_4] : memref<3x8x16xf32, #tpu.memory_space<vmem>>, vector<1x8x16xf32>
    %4 = vector.shape_cast %3 : vector<1x8x16xf32> to vector<8x16xf32>
    %cst_5 = arith.constant dense<0.000000e+00> : vector<8x64xf32>
    %5 = tpu.matmul %4, %1, %cst_5 {dimension_numbers = #tpu.dot_dimension_numbers<[1], [0], [0], [1], [0, 0, 1, 1], [], []>} : vector<8x16xf32>, vector<16x64xf32>, vector<8x64xf32> -> vector<8x64xf32>
    %c0_6 = arith.constant 0 : index
    %c0_7 = arith.constant 0 : index
    %c0_8 = arith.constant 0 : index
    %6 = vector.load %arg3[%c0_6, %c0_7, %c0_8] : memref<3x64x64xf32, #tpu.memory_space<vmem>>, vector<1x64x64xf32>
    %7 = vector.shape_cast %6 : vector<1x64x64xf32> to vector<64x64xf32>
    %cst_9 = arith.constant dense<0.000000e+00> : vector<8x64xf32>
    %8 = tpu.matmul %5, %7, %cst_9 {dimension_numbers = #tpu.dot_dimension_numbers<[1], [0], [0], [1], [0, 0, 1, 1], [], []>} : vector<8x64xf32>, vector<64x64xf32>, vector<8x64xf32> -> vector<8x64xf32>
    %9 = arith.addf %2, %8 : vector<8x64xf32>
    %c1 = arith.constant 1 : index
    %c0_10 = arith.constant 0 : index
    %c0_11 = arith.constant 0 : index
    %10 = vector.load %arg2[%c1, %c0_10, %c0_11] : memref<3x8x16xf32, #tpu.memory_space<vmem>>, vector<1x8x16xf32>
    %11 = vector.shape_cast %10 : vector<1x8x16xf32> to vector<8x16xf32>
    %cst_12 = arith.constant dense<0.000000e+00> : vector<8x64xf32>
    %12 = tpu.matmul %11, %1, %cst_12 {dimension_numbers = #tpu.dot_dimension_numbers<[1], [0], [0], [1], [0, 0, 1, 1], [], []>} : vector<8x16xf32>, vector<16x64xf32>, vector<8x64xf32> -> vector<8x64xf32>
    %c1_13 = arith.constant 1 : index
    %c0_14 = arith.constant 0 : index
    %c0_15 = arith.constant 0 : index
    %13 = vector.load %arg3[%c1_13, %c0_14, %c0_15] : memref<3x64x64xf32, #tpu.memory_space<vmem>>, vector<1x64x64xf32>
    %14 = vector.shape_cast %13 : vector<1x64x64xf32> to vector<64x64xf32>
    %cst_16 = arith.constant dense<0.000000e+00> : vector<8x64xf32>
    %15 = tpu.matmul %12, %14, %cst_16 {dimension_numbers = #tpu.dot_dimension_numbers<[1], [0], [0], [1], [0, 0, 1, 1], [], []>} : vector<8x64xf32>, vector<64x64xf32>, vector<8x64xf32> -> vector<8x64xf32>
    %16 = arith.addf %9, %15 : vector<8x64xf32>
    %c2 = arith.constant 2 : index
    %c0_17 = arith.constant 0 : index
    %c0_18 = arith.constant 0 : index
    %17 = vector.load %arg2[%c2, %c0_17, %c0_18] : memref<3x8x16xf32, #tpu.memory_space<vmem>>, vector<1x8x16xf32>
    %18 = vector.shape_cast %17 : vector<1x8x16xf32> to vector<8x16xf32>
    %cst_19 = arith.constant dense<0.000000e+00> : vector<8x64xf32>
    %19 = tpu.matmul %18, %1, %cst_19 {dimension_numbers = #tpu.dot_dimension_numbers<[1], [0], [0], [1], [0, 0, 1, 1], [], []>} : vector<8x16xf32>, vector<16x64xf32>, vector<8x64xf32> -> vector<8x64xf32>
    %c2_20 = arith.constant 2 : index
    %c0_21 = arith.constant 0 : index
    %c0_22 = arith.constant 0 : index
    %20 = vector.load %arg3[%c2_20, %c0_21, %c0_22] : memref<3x64x64xf32, #tpu.memory_space<vmem>>, vector<1x64x64xf32>
    %21 = vector.shape_cast %20 : vector<1x64x64xf32> to vector<64x64xf32>
    %cst_23 = arith.constant dense<0.000000e+00> : vector<8x64xf32>
    %22 = tpu.matmul %19, %21, %cst_23 {dimension_numbers = #tpu.dot_dimension_numbers<[1], [0], [0], [1], [0, 0, 1, 1], [], []>} : vector<8x64xf32>, vector<64x64xf32>, vector<8x64xf32> -> vector<8x64xf32>
    %23 = arith.addf %16, %22 : vector<8x64xf32>
    %c0_24 = arith.constant 0 : index
    %c0_25 = arith.constant 0 : index
    %24 = vector.load %arg4[%c0_24, %c0_25] : memref<1x64xf32, #tpu.memory_space<vmem>>, vector<1x64xf32>
    %25 = vector.broadcast %24 : vector<1x64xf32> to vector<8x64xf32>
    %26 = arith.addf %23, %25 : vector<8x64xf32>
    %cst_26 = arith.constant 0.000000e+00 : f32
    %27 = vector.broadcast %cst_26 : f32 to vector<8x64xf32>
    %28 = arith.cmpf oge, %26, %27 : vector<8x64xf32>
    %cst_27 = arith.constant 2.000000e-01 : f32
    %29 = vector.broadcast %cst_27 : f32 to vector<8x64xf32>
    %30 = arith.mulf %29, %26 : vector<8x64xf32>
    %31 = arith.select %28, %26, %30 : vector<8x64xi1>, vector<8x64xf32>
    %cst_28 = arith.constant 0.000000e+00 : f32
    %32 = vector.broadcast %cst_28 : f32 to vector<4x64xf32>
    %c0_29 = arith.constant 0 : index
    %c0_30 = arith.constant 0 : index
    %c0_31 = arith.constant 0 : index
    %33 = vector.load %arg5[%c0_29, %c0_30, %c0_31] : memref<3x4x8xf32, #tpu.memory_space<vmem>>, vector<1x4x8xf32>
    %34 = vector.shape_cast %33 : vector<1x4x8xf32> to vector<4x8xf32>
    %cst_32 = arith.constant dense<0.000000e+00> : vector<4x64xf32>
    %35 = tpu.matmul %34, %31, %cst_32 {dimension_numbers = #tpu.dot_dimension_numbers<[1], [0], [0], [1], [0, 0, 1, 1], [], []>} : vector<4x8xf32>, vector<8x64xf32>, vector<4x64xf32> -> vector<4x64xf32>
    %c0_33 = arith.constant 0 : index
    %c0_34 = arith.constant 0 : index
    %c0_35 = arith.constant 0 : index
    %36 = vector.load %arg6[%c0_33, %c0_34, %c0_35] : memref<3x64x64xf32, #tpu.memory_space<vmem>>, vector<1x64x64xf32>
    %37 = vector.shape_cast %36 : vector<1x64x64xf32> to vector<64x64xf32>
    %cst_36 = arith.constant dense<0.000000e+00> : vector<4x64xf32>
    %38 = tpu.matmul %35, %37, %cst_36 {dimension_numbers = #tpu.dot_dimension_numbers<[1], [0], [0], [1], [0, 0, 1, 1], [], []>} : vector<4x64xf32>, vector<64x64xf32>, vector<4x64xf32> -> vector<4x64xf32>
    %39 = arith.addf %32, %38 : vector<4x64xf32>
    %c1_37 = arith.constant 1 : index
    %c0_38 = arith.constant 0 : index
    %c0_39 = arith.constant 0 : index
    %40 = vector.load %arg5[%c1_37, %c0_38, %c0_39] : memref<3x4x8xf32, #tpu.memory_space<vmem>>, vector<1x4x8xf32>
    %41 = vector.shape_cast %40 : vector<1x4x8xf32> to vector<4x8xf32>
    %cst_40 = arith.constant dense<0.000000e+00> : vector<4x64xf32>
    %42 = tpu.matmul %41, %31, %cst_40 {dimension_numbers = #tpu.dot_dimension_numbers<[1], [0], [0], [1], [0, 0, 1, 1], [], []>} : vector<4x8xf32>, vector<8x64xf32>, vector<4x64xf32> -> vector<4x64xf32>
    %c1_41 = arith.constant 1 : index
    %c0_42 = arith.constant 0 : index
    %c0_43 = arith.constant 0 : index
    %43 = vector.load %arg6[%c1_41, %c0_42, %c0_43] : memref<3x64x64xf32, #tpu.memory_space<vmem>>, vector<1x64x64xf32>
    %44 = vector.shape_cast %43 : vector<1x64x64xf32> to vector<64x64xf32>
    %cst_44 = arith.constant dense<0.000000e+00> : vector<4x64xf32>
    %45 = tpu.matmul %42, %44, %cst_44 {dimension_numbers = #tpu.dot_dimension_numbers<[1], [0], [0], [1], [0, 0, 1, 1], [], []>} : vector<4x64xf32>, vector<64x64xf32>, vector<4x64xf32> -> vector<4x64xf32>
    %46 = arith.addf %39, %45 : vector<4x64xf32>
    %c2_45 = arith.constant 2 : index
    %c0_46 = arith.constant 0 : index
    %c0_47 = arith.constant 0 : index
    %47 = vector.load %arg5[%c2_45, %c0_46, %c0_47] : memref<3x4x8xf32, #tpu.memory_space<vmem>>, vector<1x4x8xf32>
    %48 = vector.shape_cast %47 : vector<1x4x8xf32> to vector<4x8xf32>
    %cst_48 = arith.constant dense<0.000000e+00> : vector<4x64xf32>
    %49 = tpu.matmul %48, %31, %cst_48 {dimension_numbers = #tpu.dot_dimension_numbers<[1], [0], [0], [1], [0, 0, 1, 1], [], []>} : vector<4x8xf32>, vector<8x64xf32>, vector<4x64xf32> -> vector<4x64xf32>
    %c2_49 = arith.constant 2 : index
    %c0_50 = arith.constant 0 : index
    %c0_51 = arith.constant 0 : index
    %50 = vector.load %arg6[%c2_49, %c0_50, %c0_51] : memref<3x64x64xf32, #tpu.memory_space<vmem>>, vector<1x64x64xf32>
    %51 = vector.shape_cast %50 : vector<1x64x64xf32> to vector<64x64xf32>
    %cst_52 = arith.constant dense<0.000000e+00> : vector<4x64xf32>
    %52 = tpu.matmul %49, %51, %cst_52 {dimension_numbers = #tpu.dot_dimension_numbers<[1], [0], [0], [1], [0, 0, 1, 1], [], []>} : vector<4x64xf32>, vector<64x64xf32>, vector<4x64xf32> -> vector<4x64xf32>
    %53 = arith.addf %46, %52 : vector<4x64xf32>
    %c0_53 = arith.constant 0 : index
    %c0_54 = arith.constant 0 : index
    %54 = vector.load %arg7[%c0_53, %c0_54] : memref<1x64xf32, #tpu.memory_space<vmem>>, vector<1x64xf32>
    %55 = vector.broadcast %54 : vector<1x64xf32> to vector<4x64xf32>
    %56 = arith.addf %53, %55 : vector<4x64xf32>
    %cst_55 = arith.constant 0.000000e+00 : f32
    %57 = vector.broadcast %cst_55 : f32 to vector<4x64xf32>
    %58 = arith.cmpf oge, %56, %57 : vector<4x64xf32>
    %cst_56 = arith.constant 2.000000e-01 : f32
    %59 = vector.broadcast %cst_56 : f32 to vector<4x64xf32>
    %60 = arith.mulf %59, %56 : vector<4x64xf32>
    %61 = arith.select %58, %56, %60 : vector<4x64xi1>, vector<4x64xf32>
    %cst_57 = arith.constant 0.000000e+00 : f32
    %62 = vector.broadcast %cst_57 : f32 to vector<4x32xf32>
    %c0_58 = arith.constant 0 : index
    %c0_59 = arith.constant 0 : index
    %c0_60 = arith.constant 0 : index
    %63 = vector.load %arg8[%c0_58, %c0_59, %c0_60] : memref<3x4x4xf32, #tpu.memory_space<vmem>>, vector<1x4x4xf32>
    %64 = vector.shape_cast %63 : vector<1x4x4xf32> to vector<4x4xf32>
    %cst_61 = arith.constant dense<0.000000e+00> : vector<4x64xf32>
    %65 = tpu.matmul %64, %61, %cst_61 {dimension_numbers = #tpu.dot_dimension_numbers<[1], [0], [0], [1], [0, 0, 1, 1], [], []>} : vector<4x4xf32>, vector<4x64xf32>, vector<4x64xf32> -> vector<4x64xf32>
    %c0_62 = arith.constant 0 : index
    %c0_63 = arith.constant 0 : index
    %c0_64 = arith.constant 0 : index
    %66 = vector.load %arg9[%c0_62, %c0_63, %c0_64] : memref<3x64x32xf32, #tpu.memory_space<vmem>>, vector<1x64x32xf32>
    %67 = vector.shape_cast %66 : vector<1x64x32xf32> to vector<64x32xf32>
    %cst_65 = arith.constant dense<0.000000e+00> : vector<4x32xf32>
    %68 = tpu.matmul %65, %67, %cst_65 {dimension_numbers = #tpu.dot_dimension_numbers<[1], [0], [0], [1], [0, 0, 1, 1], [], []>} : vector<4x64xf32>, vector<64x32xf32>, vector<4x32xf32> -> vector<4x32xf32>
    %69 = arith.addf %62, %68 : vector<4x32xf32>
    %c1_66 = arith.constant 1 : index
    %c0_67 = arith.constant 0 : index
    %c0_68 = arith.constant 0 : index
    %70 = vector.load %arg8[%c1_66, %c0_67, %c0_68] : memref<3x4x4xf32, #tpu.memory_space<vmem>>, vector<1x4x4xf32>
    %71 = vector.shape_cast %70 : vector<1x4x4xf32> to vector<4x4xf32>
    %cst_69 = arith.constant dense<0.000000e+00> : vector<4x64xf32>
    %72 = tpu.matmul %71, %61, %cst_69 {dimension_numbers = #tpu.dot_dimension_numbers<[1], [0], [0], [1], [0, 0, 1, 1], [], []>} : vector<4x4xf32>, vector<4x64xf32>, vector<4x64xf32> -> vector<4x64xf32>
    %c1_70 = arith.constant 1 : index
    %c0_71 = arith.constant 0 : index
    %c0_72 = arith.constant 0 : index
    %73 = vector.load %arg9[%c1_70, %c0_71, %c0_72] : memref<3x64x32xf32, #tpu.memory_space<vmem>>, vector<1x64x32xf32>
    %74 = vector.shape_cast %73 : vector<1x64x32xf32> to vector<64x32xf32>
    %cst_73 = arith.constant dense<0.000000e+00> : vector<4x32xf32>
    %75 = tpu.matmul %72, %74, %cst_73 {dimension_numbers = #tpu.dot_dimension_numbers<[1], [0], [0], [1], [0, 0, 1, 1], [], []>} : vector<4x64xf32>, vector<64x32xf32>, vector<4x32xf32> -> vector<4x32xf32>
    %76 = arith.addf %69, %75 : vector<4x32xf32>
    %c2_74 = arith.constant 2 : index
    %c0_75 = arith.constant 0 : index
    %c0_76 = arith.constant 0 : index
    %77 = vector.load %arg8[%c2_74, %c0_75, %c0_76] : memref<3x4x4xf32, #tpu.memory_space<vmem>>, vector<1x4x4xf32>
    %78 = vector.shape_cast %77 : vector<1x4x4xf32> to vector<4x4xf32>
    %cst_77 = arith.constant dense<0.000000e+00> : vector<4x64xf32>
    %79 = tpu.matmul %78, %61, %cst_77 {dimension_numbers = #tpu.dot_dimension_numbers<[1], [0], [0], [1], [0, 0, 1, 1], [], []>} : vector<4x4xf32>, vector<4x64xf32>, vector<4x64xf32> -> vector<4x64xf32>
    %c2_78 = arith.constant 2 : index
    %c0_79 = arith.constant 0 : index
    %c0_80 = arith.constant 0 : index
    %80 = vector.load %arg9[%c2_78, %c0_79, %c0_80] : memref<3x64x32xf32, #tpu.memory_space<vmem>>, vector<1x64x32xf32>
    %81 = vector.shape_cast %80 : vector<1x64x32xf32> to vector<64x32xf32>
    %cst_81 = arith.constant dense<0.000000e+00> : vector<4x32xf32>
    %82 = tpu.matmul %79, %81, %cst_81 {dimension_numbers = #tpu.dot_dimension_numbers<[1], [0], [0], [1], [0, 0, 1, 1], [], []>} : vector<4x64xf32>, vector<64x32xf32>, vector<4x32xf32> -> vector<4x32xf32>
    %83 = arith.addf %76, %82 : vector<4x32xf32>
    %c0_82 = arith.constant 0 : index
    %c0_83 = arith.constant 0 : index
    %84 = vector.load %arg10[%c0_82, %c0_83] : memref<1x32xf32, #tpu.memory_space<vmem>>, vector<1x32xf32>
    %85 = vector.broadcast %84 : vector<1x32xf32> to vector<4x32xf32>
    %86 = arith.addf %83, %85 : vector<4x32xf32>
    %c0_84 = arith.constant 0 : index
    %c0_85 = arith.constant 0 : index
    %c0_86 = arith.constant 0 : index
    %87 = vector.load %arg11[%c0_84, %c0_85, %c0_86] : memref<1x4x32xf32, #tpu.memory_space<vmem>>, vector<1x4x32xf32>
    %88 = vector.shape_cast %87 : vector<1x4x32xf32> to vector<4x32xf32>
    %89 = vector.shape_cast %86 : vector<4x32xf32> to vector<1x4x32xf32>
    tpu.vector_store %arg11[%c0_84, %c0_85, %c0_86], %89 {strides = array<i32>} : memref<1x4x32xf32, #tpu.memory_space<vmem>>, vector<1x4x32xf32>,
    return
  }
  func.func @transform_0(%arg0: i32) -> (i32, i32, i32) {
    %c0_i32 = arith.constant 0 : i32
    %c0_i32_0 = arith.constant 0 : i32
    %c0_i32_1 = arith.constant 0 : i32
    return %arg0, %c0_i32, %c0_i32_0 : i32, i32, i32
  }
  func.func @transform_1(%arg0: i32) -> (i32, i32, i32) {
    %c0_i32 = arith.constant 0 : i32
    %c0_i32_0 = arith.constant 0 : i32
    %c0_i32_1 = arith.constant 0 : i32
    %c0_i32_2 = arith.constant 0 : i32
    return %c0_i32, %c0_i32_0, %c0_i32_1 : i32, i32, i32
  }
  func.func @transform_2(%arg0: i32) -> (i32, i32, i32) {
    %c0_i32 = arith.constant 0 : i32
    %c0_i32_0 = arith.constant 0 : i32
    %c0_i32_1 = arith.constant 0 : i32
    %c0_i32_2 = arith.constant 0 : i32
    return %c0_i32, %c0_i32_0, %c0_i32_1 : i32, i32, i32
  }
  func.func @transform_3(%arg0: i32) -> (i32, i32) {
    %c0_i32 = arith.constant 0 : i32
    %c0_i32_0 = arith.constant 0 : i32
    %c0_i32_1 = arith.constant 0 : i32
    return %c0_i32, %c0_i32_0 : i32, i32
  }
  func.func @transform_4(%arg0: i32) -> (i32, i32, i32) {
    %c0_i32 = arith.constant 0 : i32
    %c0_i32_0 = arith.constant 0 : i32
    %c0_i32_1 = arith.constant 0 : i32
    %c0_i32_2 = arith.constant 0 : i32
    return %c0_i32, %c0_i32_0, %c0_i32_1 : i32, i32, i32
  }
  func.func @transform_5(%arg0: i32) -> (i32, i32, i32) {
    %c0_i32 = arith.constant 0 : i32
    %c0_i32_0 = arith.constant 0 : i32
    %c0_i32_1 = arith.constant 0 : i32
    %c0_i32_2 = arith.constant 0 : i32
    return %c0_i32, %c0_i32_0, %c0_i32_1 : i32, i32, i32
  }
  func.func @transform_6(%arg0: i32) -> (i32, i32) {
    %c0_i32 = arith.constant 0 : i32
    %c0_i32_0 = arith.constant 0 : i32
    %c0_i32_1 = arith.constant 0 : i32
    return %c0_i32, %c0_i32_0 : i32, i32
  }
  func.func @transform_7(%arg0: i32) -> (i32, i32, i32) {
    %c0_i32 = arith.constant 0 : i32
    %c0_i32_0 = arith.constant 0 : i32
    %c0_i32_1 = arith.constant 0 : i32
    %c0_i32_2 = arith.constant 0 : i32
    return %c0_i32, %c0_i32_0, %c0_i32_1 : i32, i32, i32
  }
  func.func @transform_8(%arg0: i32) -> (i32, i32, i32) {
    %c0_i32 = arith.constant 0 : i32
    %c0_i32_0 = arith.constant 0 : i32
    %c0_i32_1 = arith.constant 0 : i32
    %c0_i32_2 = arith.constant 0 : i32
    return %c0_i32, %c0_i32_0, %c0_i32_1 : i32, i32, i32
  }
  func.func @transform_9(%arg0: i32) -> (i32, i32) {
    %c0_i32 = arith.constant 0 : i32
    %c0_i32_0 = arith.constant 0 : i32
    %c0_i32_1 = arith.constant 0 : i32
    return %c0_i32, %c0_i32_0 : i32, i32
  }
  func.func @transform_10(%arg0: i32) -> (i32, i32, i32) {
    %c0_i32 = arith.constant 0 : i32
    %c0_i32_0 = arith.constant 0 : i32
    %c0_i32_1 = arith.constant 0 : i32
    return %arg0, %c0_i32, %c0_i32_0 : i32, i32, i32
  }
}

</mosaic_0001>

<bundles_post_ra>
// kernel: tile.18
= control target key start
LH: loop header
LB: loop body
LE: loop exit
PB: predicated region body
PF: predicated region fallthrough
CT: control target
= control target key end

     0   :  { %s22_s0 = inlined_call_operand.vmem [shape: f32[8], index: 0, kind: input, shape index: {}]   ;;  %s23_s1 = inlined_call_operand.vmem [shape: f32[8,8], index: 1, kind: output, shape index: {}]  }
   0x1   :  { %v4_v0 = vld [vmem:[%s22_s0] ss:$0 sm:$0xff] }
   0x2   :  { %5 = vst [vmem:[%s23_s1] sm:$0xff] %v4_v0 }

// kernel: tile.19
= control target key start
LH: loop header
LB: loop body
LE: loop exit
PB: predicated region body
PF: predicated region fallthrough
CT: control target
= control target key end

     0   :  { %s67_s10 = smov 56   ;;  %s68_s11 = smov 40   ;;  %vm3_vm0 = vcmask 64512   ;;  %vm9_vm1 = vcmask 523712   ;;  %vm15_vm2 = vcmask 458112   ;;  %vm21_vm3 = vcmask 392512   ;;  %s111_s0 = inlined_call_operand.vmem [shape: f32[8,8], index: 0, kind: input, shape index: {}]   ;;  %s112_s1 = inlined_call_operand.vmem [shape: f32[1,64], index: 1, kind: output, shape index: {}]  }
   0x1   :  { %v53_v0 = vld [vmem:[%s111_s0 + $0x7] sm:$0x1]   ;;  %v55_v1 = vld [vmem:[%s111_s0 + $0x5] sm:$0x1]   ;;  %v54_v2 = vld [vmem:[%s111_s0 + $0x6] sm:$0x1]  }
   0x2   :  { %7 = vrot.lane.b32.xlu0 %v53_v0, %s67_s10  ;;  %19 = vrot.lane.b32.xlu1 %v55_v1, %s68_s11  ;;  %v56_v3 = vld [vmem:[%s111_s0 + $0x4] sm:$0x1]   ;;  %v2_v4 = vld [vmem:[%s111_s0] sm:$0x1]   ;;  %s69_s18 = smov 48   ;;  %s70_s19 = smov 32  }
   0x3   :  { %4 = vst.msk [vmem:[#allocation0] sm:$0x1] %vm3_vm0, %v2_v4   ;;  %v57_v5 = vld [vmem:[%s111_s0 + $0x3] sm:$0x1]   ;;  %v58_v6 = vld [vmem:[%s111_s0 + $0x2] sm:$0x1]  }
   0x4   :  { %s71_s24 = smov 24   ;;  %s72_s25 = smov 16   ;;  %v59_v7 = vld [vmem:[%s111_s0 + $0x1] sm:$0x1]   ;;  %vm27_vm4 = vcmask 326912   ;;  %vm33_vm5 = vcmask 261312  }
   0x5   :  { %s73_s0 = smov 8   ;;  %vm39_vm6 = vcmask 195712   ;;  %vm45_vm7 = vcmask 130112  }
   0x6   :  { %13 = vrot.lane.b32.xlu0 %v54_v2, %s69_s18  ;;  %25 = vrot.lane.b32.xlu1 %v56_v3, %s70_s19 }
   0xa   :  { %31 = vrot.lane.b32.xlu0 %v57_v5, %s71_s24  ;;  %37 = vrot.lane.b32.xlu1 %v58_v6, %s72_s25 }
   0xe   :  { %43 = vrot.lane.b32.xlu0 %v59_v7, %s73_s0 }
  0x74   :  { %v8_v8 = vpop.permute.xlu0 %7   ;;  %v20_v9 = vpop.permute.xlu1 %19  }
  0x75   :  { %10 = vst.msk [vmem:[#allocation0] sm:$0x1] %vm9_vm1, %v8_v8  }
  0x78   :  { %v14_v10 = vpop.permute.xlu0 %13   ;;  %v26_v11 = vpop.permute.xlu1 %25  }
  0x79   :  { %16 = vst.msk [vmem:[#allocation0] sm:$0x1] %vm15_vm2, %v14_v10  }
  0x7a   :  { %22 = vst.msk [vmem:[#allocation0] sm:$0x1] %vm21_vm3, %v20_v9  }
  0x7b   :  { %28 = vst.msk [vmem:[#allocation0] sm:$0x1] %vm27_vm4, %v26_v11  }
  0x7c   :  { %v32_v12 = vpop.permute.xlu0 %31   ;;  %v38_v13 = vpop.permute.xlu1 %37  }
  0x7d   :  { %34 = vst.msk [vmem:[#allocation0] sm:$0x1] %vm33_vm5, %v32_v12  }
  0x7e   :  { %40 = vst.msk [vmem:[#allocation0] sm:$0x1] %vm39_vm6, %v38_v13  }
  0x80   :  { %v44_v14 = vpop.permute.xlu0 %43  }
  0x81   :  { %46 = vst.msk [vmem:[#allocation0] sm:$0x1] %vm45_vm7, %v44_v14  }
  0x88   :  { %v50_v15 = vld [vmem:[#allocation0] sm:$0x1] }
  0x89   :  { %52 = vst [vmem:[%s112_s1] sm:$0x1] %v50_v15 }

// kernel: tile.23
= control target key start
LH: loop header
LB: loop body
LE: loop exit
PB: predicated region body
PF: predicated region fallthrough
CT: control target
= control target key end

     0   :  { %s22_s0 = inlined_call_operand.vmem [shape: f32[16], index: 0, kind: input, shape index: {}]   ;;  %s23_s1 = inlined_call_operand.vmem [shape: f32[4,16], index: 1, kind: output, shape index: {}]  }
   0x1   :  { %v4_v0 = vld [vmem:[%s22_s0] ss:$0 sm:$0xff] }
   0x2   :  { %5 = vst [vmem:[%s23_s1] sm:$0xf] %v4_v0 }

// kernel: tile.24
= control target key start
LH: loop header
LB: loop body
LE: loop exit
PB: predicated region body
PF: predicated region fallthrough
CT: control target
= control target key end

     0   :  { %vm7_vm0 = vcmask 130048   ;;  %s37_s8 = smov 16   ;;  %s38_s9 = smov 32   ;;  %vm13_vm1 = vcmask 523648   ;;  %vm19_vm2 = vcmask 392448   ;;  %vm25_vm3 = vcmask 261248   ;;  %s55_s0 = inlined_call_operand.vmem [shape: f32[4,16], index: 0, kind: input, shape index: {}]   ;;  %s56_s1 = inlined_call_operand.vmem [shape: f32[1,64], index: 1, kind: output, shape index: {}]  }
   0x1   :  { %v4_v0 = vld [vmem:[%s55_s0] sm:$0xf]  ;;  %s36_s0 = smov 48  }
   0x2   :  { %5 = vst [vmem:[#allocation1] sm:$0xf] %v4_v0 }
   0x9   :  { %v10_v1 = vld [vmem:[#allocation1 + $0x3] sm:$0x1]   ;;  %v22_v2 = vld [vmem:[#allocation1 + $0x1] sm:$0x1]   ;;  %v6_v3 = vld [vmem:[#allocation1] sm:$0x1]  }
   0xa   :  { %11 = vrot.lane.b32.xlu0 %v10_v1, %s36_s0  ;;  %23 = vrot.lane.b32.xlu1 %v22_v2, %s37_s8  ;;  %v16_v4 = vld [vmem:[#allocation1 + $0x2] sm:$0x1]   ;;  %8 = vst.msk [vmem:[#allocation0] sm:$0x1] %vm7_vm0, %v6_v3  }
   0xe   :  { %17 = vrot.lane.b32.xlu0 %v16_v4, %s38_s9 }
  0x7c   :  { %v12_v5 = vpop.permute.xlu0 %11   ;;  %v24_v6 = vpop.permute.xlu1 %23  }
  0x7d   :  { %14 = vst.msk [vmem:[#allocation0] sm:$0x1] %vm13_vm1, %v12_v5  }
  0x80   :  { %v18_v7 = vpop.permute.xlu0 %17  }
  0x81   :  { %20 = vst.msk [vmem:[#allocation0] sm:$0x1] %vm19_vm2, %v18_v7  }
  0x82   :  { %26 = vst.msk [vmem:[#allocation0] sm:$0x1] %vm25_vm3, %v24_v6  }
  0x89   :  { %v30_v8 = vld [vmem:[#allocation0] sm:$0x1] }
  0x8a   :  { %32 = vst [vmem:[%s56_s1] sm:$0x1] %v30_v8 }

// kernel: tile.28
= control target key start
LH: loop header
LB: loop body
LE: loop exit
PB: predicated region body
PF: predicated region fallthrough
CT: control target
= control target key end

     0   :  { %s22_s0 = inlined_call_operand.vmem [shape: f32[8], index: 0, kind: input, shape index: {}]   ;;  %s23_s1 = inlined_call_operand.vmem [shape: f32[4,8], index: 1, kind: output, shape index: {}]  }
   0x1   :  { %v4_v0 = vld [vmem:[%s22_s0] ss:$0 sm:$0xff] }
   0x2   :  { %5 = vst [vmem:[%s23_s1] sm:$0xf] %v4_v0 }

// kernel: tile.29
= control target key start
LH: loop header
LB: loop body
LE: loop exit
PB: predicated region body
PF: predicated region fallthrough
CT: control target
= control target key end

     0   :  { %vm7_vm0 = vcmask 64512   ;;  %s37_s8 = smov 8   ;;  %s38_s9 = smov 16   ;;  %vm13_vm1 = vcmask 261312   ;;  %vm19_vm2 = vcmask 195712   ;;  %vm25_vm3 = vcmask 130112   ;;  %s55_s0 = inlined_call_operand.vmem [shape: f32[4,8], index: 0, kind: input, shape index: {}]   ;;  %s56_s1 = inlined_call_operand.vmem [shape: f32[1,32], index: 1, kind: output, shape index: {}]  }
   0x1   :  { %v4_v0 = vld [vmem:[%s55_s0] sm:$0xf]  ;;  %s36_s0 = smov 24  }
   0x2   :  { %5 = vst [vmem:[#allocation1] sm:$0xf] %v4_v0 }
   0x9   :  { %v10_v1 = vld [vmem:[#allocation1 + $0x3] sm:$0x1]   ;;  %v22_v2 = vld [vmem:[#allocation1 + $0x1] sm:$0x1]   ;;  %v6_v3 = vld [vmem:[#allocation1] sm:$0x1]  }
   0xa   :  { %11 = vrot.lane.b32.xlu0 %v10_v1, %s36_s0  ;;  %23 = vrot.lane.b32.xlu1 %v22_v2, %s37_s8  ;;  %v16_v4 = vld [vmem:[#allocation1 + $0x2] sm:$0x1]   ;;  %8 = vst.msk [vmem:[#allocation0] sm:$0x1] %vm7_vm0, %v6_v3  }
   0xe   :  { %17 = vrot.lane.b32.xlu0 %v16_v4, %s38_s9 }
  0x7c   :  { %v12_v5 = vpop.permute.xlu0 %11   ;;  %v24_v6 = vpop.permute.xlu1 %23  }
  0x7d   :  { %14 = vst.msk [vmem:[#allocation0] sm:$0x1] %vm13_vm1, %v12_v5  }
  0x80   :  { %v18_v7 = vpop.permute.xlu0 %17  }
  0x81   :  { %20 = vst.msk [vmem:[#allocation0] sm:$0x1] %vm19_vm2, %v18_v7  }
  0x82   :  { %26 = vst.msk [vmem:[#allocation0] sm:$0x1] %vm25_vm3, %v24_v6  }
  0x89   :  { %v30_v8 = vld [vmem:[#allocation0] sm:$0x1] }
  0x8a   :  { %32 = vst [vmem:[%s56_s1] sm:$0x1] %v30_v8 }

// kernel: _lambda_.1
= control target key start
LH: loop header
LB: loop body
LE: loop exit
PB: predicated region body
PF: predicated region fallthrough
CT: control target
= control target key end

     0   :  { %s2470_s13 = smov 0   ;;  %s2845_s0 = inlined_call_operand.vmem [shape: f32[2,16,64], index: 0, kind: input, shape index: {}]   ;;  %s2846_s1 = inlined_call_operand.vmem [shape: f32[3,8,16], index: 1, kind: input, shape index: {}]   ;;  %s2847_s2 = inlined_call_operand.vmem [shape: f32[3,64,64], index: 2, kind: input, shape index: {}]   ;;  %s2848_s3 = inlined_call_operand.vmem [shape: f32[1,64], index: 3, kind: input, shape index: {}]   ;;  %s2849_s4 = inlined_call_operand.vmem [shape: f32[3,4,8], index: 4, kind: input, shape index: {}]   ;;  %s2850_s5 = inlined_call_operand.vmem [shape: f32[3,64,64], index: 5, kind: input, shape index: {}]   ;;  %s2851_s6 = inlined_call_operand.vmem [shape: f32[1,64], index: 6, kind: input, shape index: {}]   ;;  %s2852_s7 = inlined_call_operand.vmem [shape: f32[3,4,4], index: 7, kind: input, shape index: {}]   ;;  %s2853_s8 = inlined_call_operand.vmem [shape: f32[3,64,32], index: 8, kind: input, shape index: {}]   ;;  %s2854_s9 = inlined_call_operand.vmem [shape: f32[1,32], index: 9, kind: input, shape index: {}]   ;;  %s2855_s10 = inlined_call_operand.vmem [shape: f32[2,4,32], index: 10, kind: output, shape index: {}]  }
   0x1 LB: > { %s1863_s14 = sadd.s32 4294967295, %s2410_s13   ;;  %p1867_p0 = scmp.ge.s32.totalorder %s2410_s13, 1  ;;  %s2410_s13 = sphi %s2470_s13, %s20_s13  }
   0x2   : > { %p312_p1 = scmp.lt.s32.totalorder %s2410_s13, 3 }
   0x4   : > { %p313_p2 = pnand %p1867_p0, %p312_p1 }
   0x5   : > { %p349_p3 = scmp.lt.s32.totalorder (!%p313_p2), %s1863_s14, 1  ;;  %v2412_v0 = vmov (!%p313_p2), 0.0|0.0   ;;  %vm2413_vm0 = vmmov (!%p313_p2), 0   ;;  %v2414_v1 = vmov (!%p313_p2), 0.0   ;;  %v435_v2 = vld [vmem:[%s2847_s2] sm:$0xff] (!%p313_p2)  ;;  %v436_v3 = vld [vmem:[%s2847_s2 + $0x8] sm:$0xff] (!%p313_p2) }
   0x6   : > { %316 = sbr.rel (%p313_p2) target bundleno = 1975 (0x7b7), region = 60  ;;  %2276 = vmatprep.subr.bf16.mxu0 (!%p313_p2), %v2412_v0  ;;  %2058 = vmatprep.mubr.msk.f32.mxu0 (!%p313_p2), %vm2413_vm0, %v2414_v1  ;;  %v2295_v4 = vpack.c.bf16 (!%p313_p2), %v436_v3, %v435_v2  ;;  %v437_v5 = vld [vmem:[%s2847_s2 + $0x10] sm:$0xff] (!%p313_p2)  ;;  %v438_v6 = vld [vmem:[%s2847_s2 + $0x18] sm:$0xff] (!%p313_p2)  ;;  %v439_v8 = vld [vmem:[%s2847_s2 + $0x20] sm:$0xff] (!%p313_p2)  ;;  %vm361_vm1 = vcmask (!%p313_p2), 130048   ;;  %vm527_vm2 = vcmask (!%p313_p2), 523264  }
   0x7   : > { %2294 = vmatprep.subr.bf16.mxu1 (!%p313_p2), %v2412_v0  ;;  %2103 = vmatprep.mubr.msk.f32.mxu1 (!%p313_p2), %vm2413_vm0, %v2414_v1  ;;  %v2298_v7 = vpack.c.bf16 (!%p313_p2), %v438_v6, %v437_v5  ;;  %v440_v9 = vld [vmem:[%s2847_s2 + $0x28] sm:$0xff] (!%p313_p2)  ;;  %v360_v14 = vld [vmem:[%s2846_s1] sm:$0xff] (!%p313_p2)  ;;  %v441_v15 = vld [vmem:[%s2847_s2 + $0x30] sm:$0xff] (!%p313_p2)  ;;  %vm844_vm4 = vcmask (!%p313_p2), 64512   ;;  %vm1330_vm6 = vcmask (!%p313_p2), 1043456   ;;  %vm1326_vm7 = vcmask (!%p313_p2), 31744  }
   0x8   : > { %2296 = vmatpush3.bf16.msra.mxu1 (!%p313_p2), %v2295_v4  ;;  %v2301_v13 = vpack.c.bf16 (!%p313_p2), %v440_v9, %v439_v8  ;;  %v442_v16 = vld [vmem:[%s2847_s2 + $0x38] sm:$0xff] (!%p313_p2)  ;;  %v1874_v17 = vld [vmem:[%s2847_s2 + $0x40] sm:$0xff] (!%p313_p2)  ;;  %v1875_v18 = vld [vmem:[%s2847_s2 + $0x48] sm:$0xff] (!%p313_p2)  ;;  %vm1808_vm8 = vcmask (!%p313_p2), 257024  }
   0x9   : > { %2297 = vmatprep.subr.bf16.mxu1 (!%p313_p2), %v2412_v0  ;;  %v2304_v19 = vpack.c.bf16 (!%p313_p2), %v442_v16, %v441_v15  ;;  %v1872_v20 = vld [vmem:[%s2846_s1 + $0x8] sm:$0xff] (!%p313_p2)  ;;  %v2283_v21 = vpack.c.bf16 (!%p313_p2), %v1875_v18, %v1874_v17  ;;  %v1876_v22 = vld [vmem:[%s2847_s2 + $0x50] sm:$0xff] (!%p313_p2)  ;;  %v1877_v23 = vld [vmem:[%s2847_s2 + $0x58] sm:$0xff] (!%p313_p2) }
   0xa   : > { %v2286_v24 = vpack.c.bf16 (!%p313_p2), %v1877_v23, %v1876_v22  ;;  %v1878_v25 = vld [vmem:[%s2847_s2 + $0x60] sm:$0xff] (!%p313_p2)  ;;  %v1879_v26 = vld [vmem:[%s2847_s2 + $0x68] sm:$0xff] (!%p313_p2)  ;;  %v1880_v28 = vld [vmem:[%s2847_s2 + $0x70] sm:$0xff] (!%p313_p2) }
   0xb   : > { %v2289_v27 = vpack.c.bf16 (!%p313_p2), %v1879_v26, %v1878_v25  ;;  %v1881_v29 = vld [vmem:[%s2847_s2 + $0x78] sm:$0xff] (!%p313_p2)  ;;  %v1886_v31 = vld [vmem:[%s2847_s2 + $0x80] sm:$0xff] (!%p313_p2)  ;;  %v1887_v32 = vld [vmem:[%s2847_s2 + $0x88] sm:$0xff] (!%p313_p2) }
   0xc   : > { %2299 = vmatpush3.bf16.msra.mxu1 (!%p313_p2), %v2298_v7  ;;  %v2292_v30 = vpack.c.bf16 (!%p313_p2), %v1881_v29, %v1880_v28  ;;  %v2310_v33 = vpack.c.bf16 (!%p313_p2), %v1887_v32, %v1886_v31  ;;  %v1888_v35 = vld [vmem:[%s2847_s2 + $0x90] sm:$0xff] (!%p313_p2)  ;;  %v1889_v36 = vld [vmem:[%s2847_s2 + $0x98] sm:$0xff] (!%p313_p2)  ;;  %v1890_v42 = vld [vmem:[%s2847_s2 + $0xa0] sm:$0xff] (!%p313_p2) }
   0xd   : > { %s2857_s14 = smov (!%p349_p3, %s1863_s14), 1  ;;  %2300 = vmatprep.subr.bf16.mxu1 %v2412_v0  ;;  %v2313_v38 = vpack.c.bf16 %v1889_v36, %v1888_v35  ;;  %v1884_v41 = vld [vmem:[%s2846_s1 + $0x10] sm:$0xff]  ;;  %v1891_v43 = vld [vmem:[%s2847_s2 + $0xa8] sm:$0xff]  ;;  %v1893_v46 = vld [vmem:[%s2847_s2 + $0xb8] sm:$0xff] }
   0xe   : > { %s1951_s23 = sshll.u32 %s2857_s14, 4  ;;  %v2316_v44 = vpack.c.bf16 %v1891_v43, %v1890_v42  ;;  %v1892_v45 = vld [vmem:[%s2847_s2 + $0xb0] sm:$0xff]  ;;  %v918_v55 = vld [vmem:[%s2850_s5] sm:$0xff]  ;;  %v919_v56 = vld [vmem:[%s2850_s5 + $0x8] sm:$0xff] }
   0xf   : > { %s353_s26 = scalar_lea.vmem %s2845_s0, %s1951_s23  ;;  %v2319_v47 = vpack.c.bf16 %v1893_v46, %v1892_v45  ;;  %v2334_v57 = vpack.c.bf16 %v919_v56, %v918_v55  ;;  %v920_v58 = vld [vmem:[%s2850_s5 + $0x10] sm:$0xff]  ;;  %v921_v59 = vld [vmem:[%s2850_s5 + $0x18] sm:$0xff]  ;;  %v922_v61 = vld [vmem:[%s2850_s5 + $0x20] sm:$0xff]  ;;  %s1870_s23 = sshll.u32 %s2857_s14, 2 }
  0x10   : > { %v358_v10 = vld [vmem:[%s353_s26] sm:$0xff]  ;;  %v359_v11 = vld [vmem:[%s353_s26 + $0x8] sm:$0xff]  ;;  %2302 = vmatpush3.bf16.msra.mxu1 %v2301_v13  ;;  %v2337_v60 = vpack.c.bf16 %v921_v59, %v920_v58  ;;  %v924_v2 = vld [vmem:[%s2850_s5 + $0x30] sm:$0xff]  ;;  %s357_s28 = scalar_lea.vmem %s2855_s10, %s1870_s23 }
  0x11   : > { %v2277_v12 = vpack.c.bf16 %v359_v11, %v358_v10  ;;  %2303 = vmatprep.subr.bf16.mxu1 %v2412_v0  ;;  %v923_v62 = vld [vmem:[%s2850_s5 + $0x28] sm:$0xff]  ;;  %v925_v3 = vld [vmem:[%s2850_s5 + $0x38] sm:$0xff]  ;;  %v1895_v6 = vld [vmem:[%s2848_s3] ss:$0 sm:$0xff] }
  0x12   : > { %v2340_v63 = vpack.c.bf16 %v923_v62, %v922_v61  ;;  %v2343_v4 = vpack.c.bf16 %v925_v3, %v924_v2  ;;  %v843_v11 = vld [vmem:[%s2849_s4] sm:$0xf]  ;;  %v1897_v15 = vld [vmem:[%s2849_s4 + $0x4] sm:$0xf]  ;;  %v1901_v17 = vld [vmem:[%s2850_s5 + $0x50] sm:$0xff] }
  0x13   : > { %2278 = vmatpush3.bf16.msra.mxu0 %v2277_v12  ;;  %v1899_v13 = vld [vmem:[%s2850_s5 + $0x40] sm:$0xff]  ;;  %v1902_v18 = vld [vmem:[%s2850_s5 + $0x58] sm:$0xff]  ;;  %v1905_v23 = vld [vmem:[%s2850_s5 + $0x70] sm:$0xff] }
  0x14   : > { %2279 = vmatprep.subr.bf16.mxu0 %v2412_v0  ;;  %2305 = vmatpush3.bf16.msra.mxu1 %v2304_v19  ;;  %v2325_v19 = vpack.c.bf16 %v1902_v18, %v1901_v17  ;;  %v1911_v28 = vld [vmem:[%s2850_s5 + $0x80] sm:$0xff]  ;;  %v1912_v29 = vld [vmem:[%s2850_s5 + $0x88] sm:$0xff]  ;;  %v1914_v35 = vld [vmem:[%s2850_s5 + $0x98] sm:$0xff] }
  0x15   : > { %2309 = vmatprep.subr.bf16.mxu1 %v2412_v0  ;;  %v1909_v32 = vld [vmem:[%s2849_s4 + $0x8] sm:$0xf]  ;;  %v1408_v56 = vld [vmem:[%s2853_s8 + $0x20] sm:$0xff]  ;;  %v1410_v59 = vld [vmem:[%s2853_s8 + $0x30] sm:$0xff] }
  0x16   : > { %2059 = vmatmul.mubr.msk.f32.vlgmr.msra.gmra.mrb[0].mxu0 %vm361_vm1, %v360_v14  ;;  %v1900_v14 = vld [vmem:[%s2850_s5 + $0x48] sm:$0xff]  ;;  %v1932_v18 = vld [vmem:[%s2853_s8 + $0x70] sm:$0xff] }
  0x17   : > { %2281 = vmatpush3.bf16.msra.mxu0 %v2277_v12  ;;  %2065 = vmatprep.mubr.msk.f32.mxu0 %vm2413_vm0, %v2414_v1  ;;  %v2322_v16 = vpack.c.bf16 %v1900_v14, %v1899_v13  ;;  %v1929_v13 = vld [vmem:[%s2853_s8 + $0x58] sm:$0xff] }
  0x18   : > { %2282 = vmatprep.subr.bf16.mxu0 %v2412_v0 }
  0x1a   : > { %2066 = vmatmul.mubr.msk.f32.vlgmr.msra.gmra.mrb[2].mxu0 %vm361_vm1, %v1872_v20  ;;  %v1903_v20 = vld [vmem:[%s2850_s5 + $0x60] sm:$0xff] }
  0x1b   : > { %2284 = vmatpush3.bf16.msra.mxu0 %v2283_v21  ;;  %2084 = vmatprep.mubr.msk.f32.mxu0 %vm2413_vm0, %v2414_v1  ;;  %v1904_v21 = vld [vmem:[%s2850_s5 + $0x68] sm:$0xff] }
  0x1c   : > { %2285 = vmatprep.subr.bf16.mxu0 %v2412_v0  ;;  %v2328_v22 = vpack.c.bf16 %v1904_v21, %v1903_v20 }
  0x1f   : > { %2287 = vmatpush3.bf16.msra.mxu0 %v2286_v24  ;;  %v1906_v24 = vld [vmem:[%s2850_s5 + $0x78] sm:$0xff] }
  0x20   : > { %2288 = vmatprep.subr.bf16.mxu0 %v2412_v0  ;;  %v2331_v25 = vpack.c.bf16 %v1906_v24, %v1905_v23  ;;  %v1939_v23 = vld [vmem:[%s2853_s8 + $0x80] sm:$0xff]  ;;  %v1940_v24 = vld [vmem:[%s2853_s8 + $0x88] sm:$0xff] }
  0x23   : > { %2290 = vmatpush3.bf16.msra.mxu0 %v2289_v27 }
  0x24   : > { %2291 = vmatprep.subr.bf16.mxu0 %v2412_v0 }
  0x27   : > { %2293 = vmatpush3.bf16.msra.mxu0 %v2292_v30 }
  0x28   : > { %2306 = vmatprep.subr.bf16.mxu0 %v2412_v0 }
  0xe9   : > { %v431_v34 = vpop.f32.mrb[0].mxu0 }
  0xea   : > { %v2060_v37 = vpop.f32.mrb[1].mxu0  ;;  %2104 = vmatmul.mubr.msk.f32.vlgmr.msra.gmra.mrb[0].mxu1 %vm527_vm2, %v431_v34  ;;  %v1913_v34 = vld [vmem:[%s2850_s5 + $0x90] sm:$0xff] }
  0xeb   : > { %2311 = vmatpush3.bf16.msra.mxu1 %v2310_v33  ;;  %2129 = vmatprep.mubr.msk.f32.mxu1 %vm2413_vm0, %v2414_v1  ;;  %v2346_v33 = vpack.c.bf16 %v1912_v29, %v1911_v28  ;;  %v2349_v36 = vpack.c.bf16 %v1914_v35, %v1913_v34  ;;  %v1915_v37 = vld [vmem:[%s2850_s5 + $0xa0] sm:$0xff]  ;;  %v2382_v28 = vpack.c.bf16 %v1940_v24, %v1939_v23  ;;  %v1941_v29 = vld [vmem:[%s2853_s8 + $0x90] sm:$0xff]  ;;  %v1946_v35 = vld [vmem:[%s2853_s8 + $0xb8] sm:$0xff] }
  0xec   : > { %2312 = vmatprep.subr.bf16.mxu1 %v2412_v0 }
  0xed   : > { %v514_v39 = vpop.f32.mrb[2].mxu0 }
  0xee   : > { %v2067_v40 = vpop.f32.mrb[3].mxu0  ;;  %2085 = vmatmul.mubr.msk.f32.vlgmr.msra.gmra.mrb[4].mxu0 %vm527_vm2, %v514_v39 }
  0xef   : > { %2308 = vmatpush3.bf16.msra.mxu0 %v2277_v12  ;;  %2110 = vmatprep.mubr.msk.f32.mxu0 %vm2413_vm0, %v2414_v1  ;;  %v1917_v40 = vld [vmem:[%s2850_s5 + $0xb0] sm:$0xff] }
  0xf0   : > { %2314 = vmatpush3.bf16.msra.mxu1 %v2313_v38  ;;  %2132 = vmatprep.subr.mxu0 %v2414_v1  ;;  %v1916_v38 = vld [vmem:[%s2850_s5 + $0xa8] sm:$0xff] }
  0xf1   : > { %2315 = vmatprep.subr.bf16.mxu1 %v2412_v0  ;;  %v2352_v39 = vpack.c.bf16 %v1916_v38, %v1915_v37 }
  0xf2   : > { %2111 = vmatmul.mubr.msk.f32.vlgmr.msra.gmra.mrb[6].mxu0 %vm361_vm1, %v1884_v41  ;;  %v1918_v41 = vld [vmem:[%s2850_s5 + $0xb8] sm:$0xff] }
  0xf3   : > { %2134 = vmatprep.mubr.msk.f32.mxu0 %vm2413_vm0, %v2414_v1  ;;  %v2355_v42 = vpack.c.bf16 %v1918_v41, %v1917_v40 }
  0xf4   : > { %2317 = vmatpush3.bf16.msra.mxu1 %v2316_v44 }
  0xf5   : > { %2318 = vmatprep.subr.bf16.mxu1 %v2412_v0 }
  0xf8   : > { %2320 = vmatpush3.bf16.msra.mxu1 %v2319_v47 }
  0xf9   : > { %2333 = vmatprep.subr.bf16.mxu1 %v2412_v0 }
 0x1bd   : > { %v670_v48 = vpop.f32.mrb[0].mxu1 }
 0x1be   : > { %v2105_v49 = vpop.f32.mrb[1].mxu1 }
 0x1c1   : > { %v597_v50 = vpop.f32.mrb[4].mxu0 }
 0x1c2   : > { %v671_v51 = vadd.f32 %v670_v48, %v597_v50  ;;  %v2086_v52 = vpop.f32.mrb[5].mxu0  ;;  %v1404_v50 = vld [vmem:[%s2853_s8] sm:$0xff] }
 0x1c5   : > { %v745_v53 = vpop.f32.mrb[6].mxu0 }
 0x1c6   : > { %v2112_v54 = vpop.f32.mrb[7].mxu0  ;;  %2130 = vmatmul.mubr.msk.f32.vlgmr.msra.gmra.mrb[2].mxu1 %vm527_vm2, %v745_v53  ;;  %v1406_v53 = vld [vmem:[%s2853_s8 + $0x10] sm:$0xff] }
 0x1c7   : > { %2177 = vmatprep.mubr.msk.f32.mxu1 %vm2413_vm0, %v2414_v1  ;;  %2335 = vmatpush3.bf16.msra.mxu1 %v2334_v57  ;;  %v1407_v54 = vld [vmem:[%s2853_s8 + $0x18] sm:$0xff]  ;;  %v1409_v57 = vld [vmem:[%s2853_s8 + $0x28] sm:$0xff] }
 0x1c8   : > { %2336 = vmatprep.subr.bf16.mxu1 %v2412_v0  ;;  %v2373_v55 = vpack.c.bf16 %v1407_v54, %v1406_v53  ;;  %v2376_v58 = vpack.c.bf16 %v1409_v57, %v1408_v56 }
 0x1cb   : > { %2338 = vmatpush3.bf16.msra.mxu1 %v2337_v60  ;;  %v1411_v60 = vld [vmem:[%s2853_s8 + $0x38] sm:$0xff] }
 0x1cc   : > { %2339 = vmatprep.subr.bf16.mxu1 %v2412_v0  ;;  %v2379_v61 = vpack.c.bf16 %v1411_v60, %v1410_v59 }
 0x1cf   : > { %2341 = vmatpush3.bf16.msra.mxu1 %v2340_v63  ;;  %v1920_v63 = vld [vmem:[%s2851_s6] ss:$0 sm:$0xff] }
 0x1d0   : > { %2342 = vmatprep.subr.bf16.mxu1 %v2412_v0 }
 0x1d3   : > { %2344 = vmatpush3.bf16.msra.mxu1 %v2343_v4 }
 0x1d4   : > { %2204 = vmatprep.subr.mxu1 %v2414_v1 }
 0x299   : > { %v827_v5 = vpop.f32.mrb[2].mxu1 }
 0x29a   : > { %v831_v7 = vadd.f32 %v827_v5, %v671_v51  ;;  %v2131_v8 = vpop.f32.mrb[3].mxu1  ;;  %v1405_v51 = vld [vmem:[%s2853_s8 + $0x8] sm:$0xff] }
 0x29b   : > { %v2370_v52 = vpack.c.bf16 %v1405_v51, %v1404_v50  ;;  %v1926_v8 = vld [vmem:[%s2853_s8 + $0x40] sm:$0xff] }
 0x29c   : > { %v839_v9 = vadd.f32 %v1895_v6, %v831_v7  ;;  %v1325_v6 = vld [vmem:[%s2852_s7] sm:$0xf] }
 0x29e   : > { %v841_v10 = vmul.f32 0.2, %v839_v9  ;;  %vm840_vm3 = vcmp.ge.f32.partialorder %v839_v9, 0.0 }
 0x2a0   : > { %v842_v12 = vsel %vm840_vm3, %v839_v9, %v841_v10  ;;  %v1927_v9 = vld [vmem:[%s2853_s8 + $0x48] sm:$0xff]  ;;  %v1923_v10 = vld [vmem:[%s2852_s7 + $0x4] sm:$0xf] }
 0x2a1   : > { %2133 = vmatpush3.msra.mxu0 %v842_v12 }
 0x2a2   : > { %2135 = vmatmul.mubr.msk.f32.vlgmr.msra.gmra.mrb[8].mxu0 %vm844_vm4, %v843_v11  ;;  %2137 = vmatprep.subr.mxu0 %v2414_v1  ;;  %v2358_v11 = vpack.c.bf16 %v1927_v9, %v1926_v8 }
 0x2a3   : > { %2138 = vmatpush3.msra.mxu0 %v842_v12  ;;  %2139 = vmatprep.mubr.msk.f32.mxu0 %vm2413_vm0, %v2414_v1 }
 0x2a4   : > { %2321 = vmatprep.subr.bf16.mxu0 %v2412_v0 }
 0x2a6   : > { %2140 = vmatmul.mubr.msk.f32.vlgmr.msra.gmra.mrb[10].mxu0 %vm844_vm4, %v1897_v15  ;;  %v1930_v15 = vld [vmem:[%s2853_s8 + $0x60] sm:$0xff] }
 0x2a7   : > { %2323 = vmatpush3.bf16.msra.mxu0 %v2322_v16  ;;  %2158 = vmatprep.mubr.msk.f32.mxu0 %vm2413_vm0, %v2414_v1  ;;  %v1931_v16 = vld [vmem:[%s2853_s8 + $0x68] sm:$0xff] }
 0x2a8   : > { %2324 = vmatprep.subr.bf16.mxu0 %v2412_v0  ;;  %v2364_v17 = vpack.c.bf16 %v1931_v16, %v1930_v15 }
 0x2ab   : > { %2326 = vmatpush3.bf16.msra.mxu0 %v2325_v19  ;;  %v1933_v19 = vld [vmem:[%s2853_s8 + $0x78] sm:$0xff] }
 0x2ac   : > { %2327 = vmatprep.subr.bf16.mxu0 %v2412_v0  ;;  %v2367_v20 = vpack.c.bf16 %v1933_v19, %v1932_v18 }
 0x2af   : > { %2329 = vmatpush3.bf16.msra.mxu0 %v2328_v22 }
 0x2b0   : > { %2330 = vmatprep.subr.bf16.mxu0 %v2412_v0 }
 0x2b3   : > { %2332 = vmatpush3.bf16.msra.mxu0 %v2331_v25 }
 0x2b4   : > { %2180 = vmatprep.subr.mxu0 %v2414_v1 }
 0x375   : > { %v914_v26 = vpop.f32.mrb[8].mxu0 }
 0x376   : > { %v2136_v27 = vpop.f32.mrb[9].mxu0  ;;  %2178 = vmatmul.mubr.msk.f32.vlgmr.msra.gmra.mrb[4].mxu1 %vm527_vm2, %v914_v26 }
 0x377   : > { %2206 = vmatprep.mubr.msk.f32.mxu1 %vm2413_vm0, %v2414_v1  ;;  %v1936_v27 = vld [vmem:[%s2852_s7 + $0x8] sm:$0xf] }
 0x379   : > { %v997_v30 = vpop.f32.mrb[10].mxu0 }
 0x37a   : > { %v2141_v31 = vpop.f32.mrb[11].mxu0  ;;  %2159 = vmatmul.mubr.msk.f32.vlgmr.msra.gmra.mrb[12].mxu0 %vm527_vm2, %v997_v30  ;;  %v1942_v30 = vld [vmem:[%s2853_s8 + $0x98] sm:$0xff] }
 0x37b   : > { %2181 = vmatpush3.msra.mxu0 %v842_v12  ;;  %2182 = vmatprep.mubr.msk.f32.mxu0 %vm2413_vm0, %v2414_v1  ;;  %v1928_v12 = vld [vmem:[%s2853_s8 + $0x50] sm:$0xff]  ;;  %v2385_v31 = vpack.c.bf16 %v1942_v30, %v1941_v29 }
 0x37c   : > { %2345 = vmatprep.subr.bf16.mxu0 %v2412_v0  ;;  %v2361_v14 = vpack.c.bf16 %v1929_v13, %v1928_v12 }
 0x37e   : > { %2183 = vmatmul.mubr.msk.f32.vlgmr.msra.gmra.mrb[14].mxu0 %vm844_vm4, %v1909_v32  ;;  %v1943_v32 = vld [vmem:[%s2853_s8 + $0xa0] sm:$0xff] }
 0x37f   : > { %2347 = vmatpush3.bf16.msra.mxu0 %v2346_v33  ;;  %2201 = vmatprep.mubr.msk.f32.mxu0 %vm2413_vm0, %v2414_v1  ;;  %v1944_v33 = vld [vmem:[%s2853_s8 + $0xa8] sm:$0xff] }
 0x380   : > { %2348 = vmatprep.subr.bf16.mxu0 %v2412_v0  ;;  %v2388_v34 = vpack.c.bf16 %v1944_v33, %v1943_v32 }
 0x383   : > { %2350 = vmatpush3.bf16.msra.mxu0 %v2349_v36 }
 0x384   : > { %2351 = vmatprep.subr.bf16.mxu0 %v2412_v0 }
 0x387   : > { %2353 = vmatpush3.bf16.msra.mxu0 %v2352_v39 }
 0x388   : > { %2354 = vmatprep.subr.bf16.mxu0 %v2412_v0 }
 0x38b   : > { %2356 = vmatpush3.bf16.msra.mxu0 %v2355_v42 }
 0x38c   : > { %2369 = vmatprep.subr.bf16.mxu0 %v2412_v0 }
 0x449   : > { %v1152_v43 = vpop.f32.mrb[4].mxu1 }
 0x44a   : > { %v2179_v44 = vpop.f32.mrb[5].mxu1 }
 0x44b   : > { %v1948_v44 = vld [vmem:[%s2854_s9] ss:$0 sm:$0xff] }
 0x44d   : > { %v1079_v45 = vpop.f32.mrb[12].mxu0 }
 0x44e   : > { %v1153_v46 = vadd.f32 %v1152_v43, %v1079_v45  ;;  %v2160_v47 = vpop.f32.mrb[13].mxu0 }
 0x451   : > { %v1227_v48 = vpop.f32.mrb[14].mxu0 }
 0x452   : > { %v2184_v49 = vpop.f32.mrb[15].mxu0  ;;  %2202 = vmatmul.mubr.msk.f32.vlgmr.msra.gmra.mrb[16].mxu0 %vm527_vm2, %v1227_v48 }
 0x453   : > { %2249 = vmatprep.mubr.msk.f32.mxu0 %vm2413_vm0, %v2414_v1  ;;  %2371 = vmatpush3.bf16.msra.mxu0 %v2370_v52 }
 0x454   : > { %2372 = vmatprep.subr.bf16.mxu0 %v2412_v0 }
 0x457   : > { %2374 = vmatpush3.bf16.msra.mxu0 %v2373_v55 }
 0x458   : > { %2375 = vmatprep.subr.bf16.mxu0 %v2412_v0 }
 0x45b   : > { %2377 = vmatpush3.bf16.msra.mxu0 %v2376_v58 }
 0x45c   : > { %2378 = vmatprep.subr.bf16.mxu0 %v2412_v0 }
 0x45f   : > { %2380 = vmatpush3.bf16.msra.mxu0 %v2379_v61 }
 0x525   : > { %v1309_v62 = vpop.f32.mrb[16].mxu0 }
 0x526   : > { %v1313_v2 = vadd.f32 %v1309_v62, %v1153_v46  ;;  %v2203_v3 = vpop.f32.mrb[17].mxu0 }
 0x528   : > { %v1321_v4 = vadd.f32 %v1920_v63, %v1313_v2 }
 0x52a   : > { %vm1322_vm5 = vcmp.ge.f32.partialorder %v1321_v4, 0.0  ;;  %v1323_v5 = vmul.f32 0.2, %v1321_v4 }
 0x52c   : > { %v1324_v7 = vsel %vm1322_vm5, %v1321_v4, %v1323_v5 }
 0x52d   : > { %2205 = vmatpush3.msk.msra.mxu1 %vm1330_vm6, %v1324_v7 }
 0x52e   : > { %2207 = vmatmul.mubr.msk.f32.vlgmr.msra.gmra.mrb[6].mxu1 %vm1326_vm7, %v1325_v6  ;;  %2209 = vmatprep.subr.mxu1 %v2414_v1 }
 0x52f   : > { %2210 = vmatpush3.msk.msra.mxu1 %vm1330_vm6, %v1324_v7  ;;  %2211 = vmatprep.mubr.msk.f32.mxu1 %vm2413_vm0, %v2414_v1 }
 0x530   : > { %2357 = vmatprep.subr.bf16.mxu1 %v2412_v0 }
 0x532   : > { %2212 = vmatmul.mubr.msk.f32.vlgmr.msra.gmra.mrb[8].mxu1 %vm1326_vm7, %v1923_v10 }
 0x533   : > { %2359 = vmatpush3.bf16.msra.mxu1 %v2358_v11  ;;  %2230 = vmatprep.mubr.msk.f32.mxu1 %vm2413_vm0, %v2414_v1 }
 0x534   : > { %2360 = vmatprep.subr.bf16.mxu1 %v2412_v0 }
 0x537   : > { %2362 = vmatpush3.bf16.msra.mxu1 %v2361_v14 }
 0x538   : > { %2363 = vmatprep.subr.bf16.mxu1 %v2412_v0 }
 0x53b   : > { %2365 = vmatpush3.bf16.msra.mxu1 %v2364_v17 }
 0x53c   : > { %2366 = vmatprep.subr.bf16.mxu1 %v2412_v0 }
 0x53f   : > { %2368 = vmatpush3.bf16.msra.mxu1 %v2367_v20 }
 0x540   : > { %2252 = vmatprep.subr.mxu1 %v2414_v1 }
 0x601   : > { %v1400_v21 = vpop.f32.mrb[6].mxu1 }
 0x602   : > { %v2208_v22 = vpop.f32.mrb[7].mxu1  ;;  %2250 = vmatmul.mubr.msk.f32.vlgmr.msra.gmra.mrb[18].mxu0 %vm527_vm2, %v1400_v21 }
 0x605   : > { %v1483_v25 = vpop.f32.mrb[8].mxu1 }
 0x606   : > { %2231 = vmatmul.mubr.msk.f32.vlgmr.msra.gmra.mrb[10].mxu1 %vm527_vm2, %v1483_v25  ;;  %v2213_v26 = vpop.f32.mrb[9].mxu1 }
 0x607   : > { %2253 = vmatpush3.msk.msra.mxu1 %vm1330_vm6, %v1324_v7  ;;  %2254 = vmatprep.mubr.msk.f32.mxu1 %vm2413_vm0, %v2414_v1 }
 0x608   : > { %2381 = vmatprep.subr.bf16.mxu1 %v2412_v0 }
 0x60a   : > { %2255 = vmatmul.mubr.msk.f32.vlgmr.msra.gmra.mrb[12].mxu1 %vm1326_vm7, %v1936_v27 }
 0x60b   : > { %2383 = vmatpush3.bf16.msra.mxu1 %v2382_v28  ;;  %2273 = vmatprep.mubr.msk.f32.mxu1 %vm2413_vm0, %v2414_v1  ;;  %v1945_v1 = vld [vmem:[%s2853_s8 + $0xb0] sm:$0xff] }
 0x60c   : > { %2384 = vmatprep.subr.bf16.mxu1 %v2412_v0  ;;  %v2391_v36 = vpack.c.bf16 %v1946_v35, %v1945_v1 }
 0x60f   : > { %2386 = vmatpush3.bf16.msra.mxu1 %v2385_v31 }
 0x610   : > { %2387 = vmatprep.subr.bf16.mxu1 %v2412_v0 }
 0x613   : > { %2389 = vmatpush3.bf16.msra.mxu1 %v2388_v34 }
 0x614   : > { %2390 = vmatprep.subr.bf16.mxu1 %v2412_v0 }
 0x617   : > { %2392 = vmatpush3.bf16.msra.mxu1 %v2391_v36 }
 0x6d5   : > { %v1638_v37 = vpop.f32.mrb[18].mxu0 }
 0x6d6   : > { %v2251_v38 = vpop.f32.mrb[19].mxu0 }
 0x6d9   : > { %v1565_v39 = vpop.f32.mrb[10].mxu1 }
 0x6da   : > { %v1639_v40 = vadd.f32 %v1638_v37, %v1565_v39  ;;  %v2232_v41 = vpop.f32.mrb[11].mxu1 }
 0x6dd   : > { %v1713_v42 = vpop.f32.mrb[12].mxu1 }
 0x6de   : > { %2274 = vmatmul.mubr.msk.f32.vlgmr.msra.gmra.mrb[14].mxu1 %vm527_vm2, %v1713_v42  ;;  %v2256_v43 = vpop.f32.mrb[13].mxu1 }
 0x7b1   : > { %v1795_v0 = vpop.f32.mrb[14].mxu1 }
 0x7b2   : > { %v1799_v45 = vadd.f32 %v1795_v0, %v1639_v40  ;;  %v2275_v46 = vpop.f32.mrb[15].mxu1 }
 0x7b4   : > { %v1807_v47 = vadd.f32 %v1948_v44, %v1799_v45 }
 0x7b6   : > { %1809 = vst.msk [vmem:[%s357_s28] sm:$0xf] %vm1808_vm8, %v1807_v47 }
 0x7b7 PF: > { %s20_s13 = sadd.s32 1, %s2410_s13  }
 0x7b8   : > { %p17_p4 = scmp.ge.s32.totalorder %s20_s13, 4  }
 0x7ba   :  { %19 = sbr.rel (!%p17_p4) target bundleno = 1 (0x1), region = 102 }

</bundles_post_ra>
